<compile_context>
chip_gen: v7x
topology: tpu7x:2x2x1
jax: 0.10.0
libtpu: 0.0.40
codegen_flags: <defaults>
</compile_context>

<pallas_src>
import functools

import jax
import jax.numpy as jnp
from jax.experimental import pallas as pl
from jax.experimental.pallas import tpu as pltpu


# ---------------------------------------------------------------------------
# Kernels
# ---------------------------------------------------------------------------
def se_fused_kernel(x_ref, w1t_ref, b1_ref, w2t_ref, b2_ref, o_ref, *, hw):
    # x_ref / o_ref: (NB, C, HW) tile; HW on the 128-lane axis, C on sublanes.
    # Squeeze: global average pool over HW, accumulated in f32.
    pooled = jnp.sum(x_ref[...].astype(jnp.float32), axis=-1) * (1.0 / hw)  # (NB, C)

    # Excitation: two 1x1 convs == dense layers over channels (tiny matmuls).
    h = jnp.dot(pooled, w1t_ref[...], preferred_element_type=jnp.float32) + b1_ref[...]
    h = jnp.maximum(h, 0.0)                                                  # ReLU
    s = jnp.dot(h, w2t_ref[...], preferred_element_type=jnp.float32) + b2_ref[...]
    s = jax.nn.sigmoid(s)                                                    # (NB, C) f32

    # Scale: cast once, multiply in the native dtype (bf16 stays bf16).
    s = s.astype(o_ref.dtype)
    o_ref[...] = x_ref[...] * s[:, :, None]


def se_pool_excite_kernel(x_ref, w1t_ref, b1_ref, w2t_ref, b2_ref, s_ref, *, hw, thw):
    # Fallback pass 1: accumulate the spatial sum across HW blocks, then run
    # the excitation on the last block.  s_ref: (1, 1, C) f32 accumulator.
    k = pl.program_id(1)

    @pl.when(k == 0)
    def _():
        s_ref[...] = jnp.zeros_like(s_ref)

    xb = x_ref[...].astype(jnp.float32)                       # (1, C, THW)
    if hw % thw == 0:
        part = jnp.sum(xb, axis=-1)                           # (1, C)
    else:
        lane = jax.lax.broadcasted_iota(jnp.int32, xb.shape, 2)
        valid = (k * thw + lane) < hw
        part = jnp.sum(jnp.where(valid, xb, 0.0), axis=-1)
    s_ref[...] += part[:, None, :]

    @pl.when(k == pl.num_programs(1) - 1)
    def _():
        pooled = s_ref[...][:, 0, :] * (1.0 / hw)             # (1, C)
        h = jnp.dot(pooled, w1t_ref[...], preferred_element_type=jnp.float32) + b1_ref[...]
        h = jnp.maximum(h, 0.0)
        s = jax.nn.sigmoid(
            jnp.dot(h, w2t_ref[...], preferred_element_type=jnp.float32) + b2_ref[...])
        s_ref[...] = s[:, None, :]


def se_scale_kernel(x_ref, s_ref, o_ref):
    # Fallback pass 2: stream x once more and apply the per-image scale.
    s = s_ref[...][:, 0, :].astype(o_ref.dtype)               # (1, C)
    o_ref[...] = x_ref[...] * s[:, :, None]


# ---------------------------------------------------------------------------
# Sizing helpers (padded-tile VMEM accounting)
# ---------------------------------------------------------------------------
def _round_up(a, m):
    return ((a + m - 1) // m) * m


def _padded_image_bytes(C, HW, itemsize):
    sub = max(8, 32 // itemsize)  # sublane multiple: 8 f32 / 16 bf16 / 32 i8
    return _round_up(C, sub) * _round_up(HW, 128) * itemsize


def _weight_bytes(C, Cr):
    # w1t (C,Cr), b1 (1,Cr), w2t (Cr,C), b2 (1,C) -- all f32, padded layout.
    return 4 * (_round_up(C, 8) * _round_up(Cr, 128)
                + _round_up(Cr, 8) * _round_up(C, 128)
                + 8 * _round_up(Cr, 128)
                + 8 * _round_up(C, 128))


# ---------------------------------------------------------------------------
# Wrapper
# ---------------------------------------------------------------------------
def se_block(x, w1, b1, w2, b2, *, tile_budget_bytes=4 * 1024 * 1024):
    """SEBlock forward.

    x: (N, C, H, W) NCHW; w1: (Cr, C, 1, 1); b1: (Cr,); w2: (C, Cr, 1, 1); b2: (C,).
    Returns NCHW output with the same dtype as x.
    """
    N, C, H, W = x.shape
    Cr = w1.shape[0]
    HW = H * W
    itemsize = x.dtype.itemsize

    # (N, C, HW): contiguous fold of H,W -- no transpose, no extra HBM pass.
    xr = x.reshape(N, C, HW)
    w1t = w1.reshape(Cr, C).T.astype(jnp.float32)   # (C, Cr)
    w2t = w2.reshape(C, Cr).T.astype(jnp.float32)   # (Cr, C)
    b1r = b1.reshape(1, Cr).astype(jnp.float32)
    b2r = b2.reshape(1, C).astype(jnp.float32)

    per_img = _padded_image_bytes(C, HW, itemsize)
    w_bytes = _weight_bytes(C, Cr)

    if per_img <= tile_budget_bytes:
        out = _se_fused(xr, w1t, b1r, w2t, b2r, N, C, Cr, HW, itemsize,
                        per_img, w_bytes, tile_budget_bytes)
    else:
        out = _se_split_hw(xr, w1t, b1r, w2t, b2r, N, C, Cr, HW, itemsize,
                           w_bytes, tile_budget_bytes)
    return out.reshape(N, C, H, W)


def _se_fused(xr, w1t, b1r, w2t, b2r, N, C, Cr, HW, itemsize,
              per_img, w_bytes, budget):
    # Images per grid step: biggest padded tile under budget, but keep the
    # grid long enough for pipelined overlap (>=4 steps / >=2 per v7x TC).
    nb = int(max(1, min(N, budget // per_img)))
    if N >= 4:
        nb = min(nb, N // 4)
    elif N >= 2:
        nb = min(nb, N // 2)
    while N % nb:
        nb -= 1

    tile_bytes = nb * per_img
    vmem_limit = int(min(48 << 20,
                         max(16 << 20, 4 * tile_bytes + 2 * w_bytes + (2 << 20))))

    cost = pl.CostEstimate(
        flops=int(3 * N * C * HW + 4 * N * C * Cr),
        transcendentals=int(N * C),
        bytes_accessed=int(2 * N * C * HW * itemsize + w_bytes),
    )

    return pl.pallas_call(
        functools.partial(se_fused_kernel, hw=HW),
        out_shape=jax.ShapeDtypeStruct((N, C, HW), xr.dtype),
        grid_spec=pltpu.PrefetchScalarGridSpec(
            num_scalar_prefetch=0,
            grid=(N // nb,),
            in_specs=[
                pl.BlockSpec((nb, C, HW), lambda n: (n, 0, 0)),   # x tile
                pl.BlockSpec((C, Cr), lambda n: (0, 0)),          # W1^T
                pl.BlockSpec((1, Cr), lambda n: (0, 0)),          # b1
                pl.BlockSpec((Cr, C), lambda n: (0, 0)),          # W2^T
                pl.BlockSpec((1, C), lambda n: (0, 0)),           # b2
            ],
            out_specs=pl.BlockSpec((nb, C, HW), lambda n: (n, 0, 0)),
        ),
        compiler_params=pltpu.CompilerParams(
            dimension_semantics=("parallel",),
            vmem_limit_bytes=vmem_limit,
        ),
        cost_estimate=cost,
    )(xr, w1t, b1r, w2t, b2r)


def _se_split_hw(xr, w1t, b1r, w2t, b2r, N, C, Cr, HW, itemsize, w_bytes, budget):
    # One padded image exceeds the tile budget: block the HW (lane) axis.
    sub = max(8, 32 // itemsize)
    c_pad = _round_up(C, sub)
    hw_pad = _round_up(HW, 128)
    thw = max(128, (budget // (c_pad * itemsize) // 128) * 128)
    thw = min(thw, hw_pad)
    K = (HW + thw - 1) // thw

    tile_bytes = c_pad * thw * itemsize
    vmem_limit = int(min(48 << 20,
                         max(16 << 20, 4 * tile_bytes + 2 * w_bytes + (2 << 20))))

    # Pass 1: pooled sum accumulated across HW blocks (resident output block),
    # excitation applied on the last block -> per-image scale (N, 1, C) f32.
    scale = pl.pallas_call(
        functools.partial(se_pool_excite_kernel, hw=HW, thw=thw),
        out_shape=jax.ShapeDtypeStruct((N, 1, C), jnp.float32),
        grid_spec=pltpu.PrefetchScalarGridSpec(
            num_scalar_prefetch=0,
            grid=(N, K),
            in_specs=[
                pl.BlockSpec((1, C, thw), lambda n, k: (n, 0, k)),
                pl.BlockSpec((C, Cr), lambda n, k: (0, 0)),
                pl.BlockSpec((1, Cr), lambda n, k: (0, 0)),
                pl.BlockSpec((Cr, C), lambda n, k: (0, 0)),
                pl.BlockSpec((1, C), lambda n, k: (0, 0)),
            ],
            out_specs=pl.BlockSpec((1, 1, C), lambda n, k: (n, 0, 0)),
        ),
        compiler_params=pltpu.CompilerParams(
            dimension_semantics=("parallel", "arbitrary"),
            vmem_limit_bytes=vmem_limit,
        ),
        cost_estimate=pl.CostEstimate(
            flops=int(N * C * HW + 4 * N * C * Cr),
            transcendentals=int(N * C),
            bytes_accessed=int(N * C * HW * itemsize + w_bytes),
        ),
    )(xr, w1t, b1r, w2t, b2r)

    # Pass 2: stream x again and apply the scale (fully parallel grid).
    return pl.pallas_call(
        se_scale_kernel,
        out_shape=jax.ShapeDtypeStruct((N, C, HW), xr.dtype),
        grid_spec=pltpu.PrefetchScalarGridSpec(
            num_scalar_prefetch=0,
            grid=(N, K),
            in_specs=[
                pl.BlockSpec((1, C, thw), lambda n, k: (n, 0, k)),
                pl.BlockSpec((1, 1, C), lambda n, k: (n, 0, 0)),
            ],
            out_specs=pl.BlockSpec((1, C, thw), lambda n, k: (n, 0, k)),
        ),
        compiler_params=pltpu.CompilerParams(
            dimension_semantics=("parallel", "parallel"),
            vmem_limit_bytes=vmem_limit,
        ),
        cost_estimate=pl.CostEstimate(
            flops=int(N * C * HW),
            transcendentals=0,
            bytes_accessed=int(2 * N * C * HW * itemsize),
        ),
    )(xr, scale)


# ---------------------------------------------------------------------------
# Pure-JAX reference mirroring the PyTorch forward
# ---------------------------------------------------------------------------
def se_block_ref(x, w1, b1, w2, b2):
    N, C, H, W = x.shape
    Cr = w1.shape[0]
    pooled = jnp.mean(x.astype(jnp.float32), axis=(2, 3))          # (N, C)
    h = jnp.maximum(pooled @ w1.reshape(Cr, C).T + b1, 0.0)        # (N, Cr)
    s = jax.nn.sigmoid(h @ w2.reshape(C, Cr).T + b2)               # (N, C)
    return (x * s[:, :, None, None].astype(x.dtype)).astype(x.dtype)


if __name__ == "__main__":
    # SEBlock(in_channels=32, reduction=16) -> Cr = 2
    N, C, H, W = 2, 32, 8, 8
    reduction = 16
    Cr = C // reduction

    key = jax.random.PRNGKey(0)
    kx, k1, k2, k3, k4, kx2 = jax.random.split(key, 6)

    x = jax.random.normal(kx, (N, C, H, W), dtype=jnp.float32)
    w1 = jax.random.normal(k1, (Cr, C, 1, 1), dtype=jnp.float32) * 0.1
    b1 = jax.random.normal(k2, (Cr,), dtype=jnp.float32) * 0.1
    w2 = jax.random.normal(k3, (C, Cr, 1, 1), dtype=jnp.float32) * 0.1
    b2 = jax.random.normal(k4, (C,), dtype=jnp.float32) * 0.1

    # Path 1: fused single-pass kernel (whole image tile fits in VMEM).
    out = se_block(x, w1, b1, w2, b2)
    jax.block_until_ready(out)
    ref = se_block_ref(x, w1, b1, w2, b2)
    assert out.shape == (N, C, H, W)
    assert jnp.allclose(out, ref, atol=1e-5, rtol=1e-5)

    # Path 2: HW-split fallback (forced with a tiny tile budget).
    x2 = jax.random.normal(kx2, (N, C, 16, 16), dtype=jnp.float32)
    out2 = se_block(x2, w1, b1, w2, b2, tile_budget_bytes=8 * 1024)
    jax.block_until_ready(out2)
    ref2 = se_block_ref(x2, w1, b1, w2, b2)
    assert out2.shape == (N, C, 16, 16)
    assert jnp.allclose(out2, ref2, atol=1e-5, rtol=1e-5)

    print("KERNEL_OK")
</pallas_src>

<mosaic_0001>
module attributes {stable_mosaic.version = 11 : i64} {
  func.func @se_fused_kernel(%arg0: i32, %arg1: memref<1x32x64xf32, #tpu.memory_space<vmem>>, %arg2: memref<32x2xf32, #tpu.memory_space<vmem>>, %arg3: memref<1x2xf32, #tpu.memory_space<vmem>>, %arg4: memref<2x32xf32, #tpu.memory_space<vmem>>, %arg5: memref<1x32xf32, #tpu.memory_space<vmem>>, %arg6: memref<1x32x64xf32, #tpu.memory_space<vmem>>) attributes {dimension_semantics = [#tpu.dimension_semantics<parallel>], iteration_bounds = array<i64: 2>, scalar_prefetch = 0 : i64, scratch_operands = 0 : i64, tpu.core_type = #tpu.core_type<tc>, window_params = [{transform_indices = @transform_0, window_bounds = array<i64: 1, 32, 64>}, {pipeline_mode = #tpu.pipeline_mode<synchronous>, transform_indices = @transform_1, window_bounds = array<i64: 32, 2>}, {pipeline_mode = #tpu.pipeline_mode<synchronous>, transform_indices = @transform_2, window_bounds = array<i64: 1, 2>}, {pipeline_mode = #tpu.pipeline_mode<synchronous>, transform_indices = @transform_3, window_bounds = array<i64: 2, 32>}, {pipeline_mode = #tpu.pipeline_mode<synchronous>, transform_indices = @transform_4, window_bounds = array<i64: 1, 32>}, {transform_indices = @transform_5, window_bounds = array<i64: 1, 32, 64>}]} {
    %c0 = arith.constant 0 : index
    %c0_0 = arith.constant 0 : index
    %c0_1 = arith.constant 0 : index
    %0 = vector.load %arg1[%c0, %c0_0, %c0_1] : memref<1x32x64xf32, #tpu.memory_space<vmem>>, vector<1x32x64xf32>
    %cst = arith.constant dense<0.000000e+00> : vector<1x32xf32>
    %1 = vector.multi_reduction <add>, %0, %cst [2] : vector<1x32x64xf32> to vector<1x32xf32>
    %cst_2 = arith.constant 1.562500e-02 : f32
    %2 = vector.broadcast %cst_2 : f32 to vector<1x32xf32>
    %3 = arith.mulf %1, %2 : vector<1x32xf32>
    %c0_3 = arith.constant 0 : index
    %c0_4 = arith.constant 0 : index
    %4 = vector.load %arg2[%c0_3, %c0_4] : memref<32x2xf32, #tpu.memory_space<vmem>>, vector<32x2xf32>
    %cst_5 = arith.constant dense<0.000000e+00> : vector<1x2xf32>
    %5 = tpu.matmul %3, %4, %cst_5 {dimension_numbers = #tpu.dot_dimension_numbers<[1], [0], [0], [1], [0, 0, 1, 1], [], []>} : vector<1x32xf32>, vector<32x2xf32>, vector<1x2xf32> -> vector<1x2xf32>
    %c0_6 = arith.constant 0 : index
    %c0_7 = arith.constant 0 : index
    %6 = vector.load %arg3[%c0_6, %c0_7] : memref<1x2xf32, #tpu.memory_space<vmem>>, vector<1x2xf32>
    %7 = arith.addf %5, %6 : vector<1x2xf32>
    %cst_8 = arith.constant 0.000000e+00 : f32
    %8 = vector.broadcast %cst_8 : f32 to vector<1x2xf32>
    %9 = arith.maximumf %7, %8 : vector<1x2xf32>
    %c0_9 = arith.constant 0 : index
    %c0_10 = arith.constant 0 : index
    %10 = vector.load %arg4[%c0_9, %c0_10] : memref<2x32xf32, #tpu.memory_space<vmem>>, vector<2x32xf32>
    %cst_11 = arith.constant dense<0.000000e+00> : vector<1x32xf32>
    %11 = tpu.matmul %9, %10, %cst_11 {dimension_numbers = #tpu.dot_dimension_numbers<[1], [0], [0], [1], [0, 0, 1, 1], [], []>} : vector<1x2xf32>, vector<2x32xf32>, vector<1x32xf32> -> vector<1x32xf32>
    %c0_12 = arith.constant 0 : index
    %c0_13 = arith.constant 0 : index
    %12 = vector.load %arg5[%c0_12, %c0_13] : memref<1x32xf32, #tpu.memory_space<vmem>>, vector<1x32xf32>
    %13 = arith.addf %11, %12 : vector<1x32xf32>
    %14 = arith.negf %13 : vector<1x32xf32>
    %15 = math.exp %14 : vector<1x32xf32>
    %cst_14 = arith.constant 1.000000e+00 : f32
    %16 = vector.broadcast %cst_14 : f32 to vector<1x32xf32>
    %17 = arith.addf %16, %15 : vector<1x32xf32>
    %18 = arith.divf %16, %17 : vector<1x32xf32>
    %c0_15 = arith.constant 0 : index
    %c0_16 = arith.constant 0 : index
    %c0_17 = arith.constant 0 : index
    %19 = vector.load %arg1[%c0_15, %c0_16, %c0_17] : memref<1x32x64xf32, #tpu.memory_space<vmem>>, vector<1x32x64xf32>
    %20 = vector.shape_cast %18 : vector<1x32xf32> to vector<1x32x1xf32>
    %21 = vector.broadcast %20 : vector<1x32x1xf32> to vector<1x32x64xf32>
    %22 = arith.mulf %19, %21 : vector<1x32x64xf32>
    %c0_18 = arith.constant 0 : index
    %c0_19 = arith.constant 0 : index
    %c0_20 = arith.constant 0 : index
    %23 = vector.load %arg6[%c0_18, %c0_19, %c0_20] : memref<1x32x64xf32, #tpu.memory_space<vmem>>, vector<1x32x64xf32>
    tpu.vector_store %arg6[%c0_18, %c0_19, %c0_20], %22 {strides = array<i32>} : memref<1x32x64xf32, #tpu.memory_space<vmem>>, vector<1x32x64xf32>,
    return
  }
  func.func @transform_0(%arg0: i32) -> (i32, i32, i32) {
    %c0_i32 = arith.constant 0 : i32
    %c0_i32_0 = arith.constant 0 : i32
    %c0_i32_1 = arith.constant 0 : i32
    return %arg0, %c0_i32, %c0_i32_0 : i32, i32, i32
  }
  func.func @transform_1(%arg0: i32) -> (i32, i32) {
    %c0_i32 = arith.constant 0 : i32
    %c0_i32_0 = arith.constant 0 : i32
    %c0_i32_1 = arith.constant 0 : i32
    return %c0_i32, %c0_i32_0 : i32, i32
  }
  func.func @transform_2(%arg0: i32) -> (i32, i32) {
    %c0_i32 = arith.constant 0 : i32
    %c0_i32_0 = arith.constant 0 : i32
    %c0_i32_1 = arith.constant 0 : i32
    return %c0_i32, %c0_i32_0 : i32, i32
  }
  func.func @transform_3(%arg0: i32) -> (i32, i32) {
    %c0_i32 = arith.constant 0 : i32
    %c0_i32_0 = arith.constant 0 : i32
    %c0_i32_1 = arith.constant 0 : i32
    return %c0_i32, %c0_i32_0 : i32, i32
  }
  func.func @transform_4(%arg0: i32) -> (i32, i32) {
    %c0_i32 = arith.constant 0 : i32
    %c0_i32_0 = arith.constant 0 : i32
    %c0_i32_1 = arith.constant 0 : i32
    return %c0_i32, %c0_i32_0 : i32, i32
  }
  func.func @transform_5(%arg0: i32) -> (i32, i32, i32) {
    %c0_i32 = arith.constant 0 : i32
    %c0_i32_0 = arith.constant 0 : i32
    %c0_i32_1 = arith.constant 0 : i32
    return %arg0, %c0_i32, %c0_i32_0 : i32, i32, i32
  }
}

</mosaic_0001>

<bundles_post_ra>
// kernel: tpu_custom_call.1
= control target key start
LH: loop header
LB: loop body
LE: loop exit
PB: predicated region body
PF: predicated region fallthrough
CT: control target
= control target key end

     0   :  { %10 = vsyncpa [#allocation3], 0  ;;  %s1028_s0 = inlined_call_operand.hbm [shape: f32[2,32,64], index: 0, kind: input, shape index: {}]   ;;  %s1029_s1 = inlined_call_operand.vmem [shape: f32[32,2], index: 1, kind: input, shape index: {}]   ;;  %s1030_s2 = inlined_call_operand.vmem [shape: f32[1,2], index: 2, kind: input, shape index: {}]   ;;  %s1031_s3 = inlined_call_operand.vmem [shape: f32[2,32], index: 3, kind: input, shape index: {}]   ;;  %s1032_s4 = inlined_call_operand.vmem [shape: f32[1,32], index: 4, kind: input, shape index: {}]   ;;  %s1033_s5 = inlined_call_operand.hbm [shape: f32[2,32,64], index: 5, kind: output, shape index: {}]  }
   0x1   :  { %12 = vsyncpa [#allocation3 + $0x1], 0 }
   0x2   :  { %13 = vsyncpa [#allocation4], 0 }
   0x3   :  { %15 = vsyncpa [#allocation4 + $0x1], 0  ;;  %s817_s18 = smov 0   ;;  %s819_s19 = smov 0  }
   0x4   :  { %s821_s20 = smov 0   ;;  %s823_s21 = smov 0  }
   0x5 LB: > { %s838_s22 = sadd.s32 4294967295, %s776_s21   ;;  %s574_s23 = sadd.s32 4294967294, %s776_s21   ;;  %s776_s21 = sphi %s823_s21, %s1046_s21   ;;  %s772_s20 = sphi %s821_s20, %s1045_s20   ;;  %s768_s19 = sphi %s819_s19, %s1044_s19   ;;  %s764_s18 = sphi %s817_s18, %s1043_s18  }
   0x6   : > { %s842_s24 = sadd.s32 1, %s776_s21   ;;  %s28_s25 = sadd.s32 1, %s772_s20 }
   0x7   : > { %s25_s26 = ssub.s32 %s776_s21, %s842_s24  ;;  %p35_p0 = scmp.ne.s32.totalorder %s772_s20, %s768_s19 }
   0x8   : > { %p26_p1 = scmp.eq.s32.totalorder %s25_s26, 0  ;;  %p36_p2 = scmp.eq.s32.totalorder %s776_s21, 0 }
   0x9   : > { %p41_p3 = scmp.ne.s32.totalorder %s768_s19, %s764_s18  ;;  %p42_p4 = scmp.eq.s32.totalorder %s838_s22, 0 }
   0xa   : > { %s854_s27 = scalar_select %p26_p1, %s772_s20, %s28_s25  }
   0xb   : > { %p856_p5 = por %p36_p2, %p35_p0  ;;  %p860_p6 = por %p42_p4, %p41_p3 }
   0xc   : > { %p149_p7 = scmp.eq.s32.totalorder %s838_s22, 1  ;;  %p155_p8 = scmp.eq.s32.totalorder %s574_s23, 1 }
   0xd   : > { %p635_p10 = scmp.lt.s32.totalorder %s776_s21, 2  ;;  %s187_s7 = sand.u32 1, %s772_s20  }
   0xe   : > { %p867_p11 = por %p149_p7, %p35_p0  ;;  %p871_p12 = por %p155_p8, %p41_p3 }
   0xf   : > { %s592_s8 = sshll.u32 %s776_s21, 9  ;;  %s577_s9 = sshll.u32 %s187_s7, 5 }
  0x10   : > { %s1037_s30 = scalar_select %p867_p11, 1, 0 }
  0x11   : > { %s1038_s6 = scalar_select %p871_p12, 1, 0 }
  0x12   : > { %s880_s12 = scalar_lea.hbm %s1028_s0, %s592_s8  ;;  %s191_s13 = scalar_lea.vmem [#allocation2], %s577_s9 }
  0x13   : > { %s198_s14 = sshll.u32 %s191_s13, 4  ;;  %p884_p13 = pnand %p635_p10, %p856_p5  ;;  %s888_s14 = int_to_ptr.vmem [resolvable:$true] %s198_s14 }
  0x14   : > { %s890_s16 = scalar_lea.sflag [#allocation3], %s187_s7  ;;  %s680_s17 = scalar_lea.hbm %s880_s12, 512 }
  0x15   : > { %p681_p0 = scmp.ne.s32.totalorder %s880_s12, %s680_s17  ;;  %p682_p1 = pneg %p884_p13 }
  0x16   : > { %s685_s26 = scalar_lea.hbm %s1028_s0, 1024  ;;  %p686_p4 = scmp.lt.u32.totalorder %s880_s12, %s1028_s0 }
  0x17   : > { %p683_p2 = pnand %p682_p1, %p681_p0  ;;  %p687_p5 = scmp.lt.u32.totalorder %s685_s26, %s680_s17 }
  0x18   : > { %p689_p8 = scmp.lt.u32.totalorder %s680_s17, %s880_s12 }
  0x19   : > { %p684_p3 = pneg %p683_p2  ;;  %p688_p7 = por %p687_p5, %p686_p4 }
  0x1b   : > { %p690_p10 = por %p689_p8, %p688_p7 }
  0x1d   : > { %p691_p9 = pnand %p690_p10, %p684_p3 }
  0x1f   : > { %694 = shalt.err (!%p691_p9)
}
  0x20   : > { %s695_s7 = scalar_lea.vmem %s888_s14, 512  ;;  %s778_s9 = smov [#allocation2]  }
  0x21   : > { %p696_p0 = scmp.ne.s32.totalorder %s888_s14, %s695_s7  ;;  %s700_s10 = sshll.u32 %s778_s9, 4  ;;  %s701_s10 = int_to_ptr.vmem [resolvable:$false] %s700_s10 }
  0x22   : > { %s702_s11 = scalar_lea.vmem %s701_s10, 1024  ;;  %p703_p11 = scmp.lt.s32.totalorder %s888_s14, %s701_s10 }
  0x23   : > { %p698_p2 = pnand %p696_p0, %p682_p1  ;;  %p704_p4 = scmp.lt.s32.totalorder %s702_s11, %s695_s7 }
  0x25   : > { %p699_p12 = pneg %p698_p2  ;;  %p705_p5 = por %p704_p4, %p703_p11 }
  0x27   : > { %p706_p7 = pnand %p705_p5, %p699_p12 }
  0x29   : > { %709 = shalt.err (!%p706_p7)
}
  0x2a   : > { %s779_s13 = smov 128   ;;  %s780_s17 = smov 8  }
  0x2b   : > { %630 = dma.hbm_to_vmem [thread:$0]  (!%p884_p13), %s880_s12, 512, %s888_s14, %s890_s16, %s779_s13, %s779_s13, %s780_s17  }
  0x2c   : > { %p580_p9 = scmp.ge.s32.totalorder %s776_s21, 1  ;;  %p206_p1 = scmp.lt.s32.totalorder %s776_s21, 3 }
  0x2e   : > { %p207_p3 = pnand %p580_p9, %p206_p1 }
  0x2f   : > { %s921_s23 = sand.u32 (!%p207_p3), 1, %s768_s19  }
  0x30   : > { %210 = sbr.rel (%p207_p3) target bundleno = 809 (0x329), region = 40  ;;  %s581_s25 = sshll.u32 (!%p207_p3), %s921_s23, 5 }
  0x31   : > { %s213_s26 = scalar_lea.sflag (!%p207_p3), [#allocation3], %s921_s23  ;;  %s216_s28 = scalar_lea.vmem (!%p207_p3), [#allocation2], %s581_s25 }
  0x37   : > { %755 = dma.done.wait (%p860_p6), %s213_s26, 512  }
  0x38   : > { %757 = vsyncadd (%p860_p6), %s213_s26, 4294966784  ;;  %vm247_vm0 = vcmask 523264   ;;  %v931_v0 = vld [vmem:[%s216_s28] sm:$0xff]  ;;  %v933_v1 = vld [vmem:[%s216_s28 + $0x10] sm:$0xff]  ;;  %v781_v10 = vmov 0.0|0.0   ;;  %vm782_vm1 = vmmov 0   ;;  %v273_v16 = vlaneseq }
  0x39   : > { %v935_v2 = vld [vmem:[%s216_s28 + $0x8] sm:$0xff]  ;;  %v248_v3 = vsel %vm247_vm0, %v931_v0, 0.0  ;;  %v254_v4 = vsel %vm247_vm0, %v933_v1, 0.0  ;;  %v941_v5 = vld [vmem:[%s216_s28 + $0x18] sm:$0xff]  ;;  %v264_v8 = vld [vmem:[%s1029_s1] sm:$0xff]  ;;  %617 = vmatprep.subr.bf16.mxu0 %v781_v10  ;;  %v783_v15 = vmov 0.0  }
  0x3a   : > { %249 = vadd.xlane.f32.xlu0 %v248_v3  ;;  %255 = vadd.xlane.f32.xlu1 %v254_v4  ;;  %v251_v6 = vsel %vm247_vm0, %v935_v2, 0.0  ;;  %v257_v7 = vsel %vm247_vm0, %v941_v5, 0.0  ;;  %v265_v9 = vld [vmem:[%s1029_s1 + $0x8] sm:$0xff]  ;;  %v266_v12 = vld [vmem:[%s1029_s1 + $0x10] sm:$0xff]  ;;  %v267_v13 = vld [vmem:[%s1029_s1 + $0x18] sm:$0xff]  ;;  %v274_v17 = vand.u32 127, %v273_v16 }
  0x3b   : > { %v618_v11 = vpack.c.bf16 %v265_v9, %v264_v8  ;;  %v621_v14 = vpack.c.bf16 %v267_v13, %v266_v12  ;;  %609 = vmatprep.mubr.msk.f32.mxu0 %vm782_vm1, %v783_v15  ;;  %612 = vmatprep.subr.mxu1 %v783_v15  ;;  %v276_v18 = vshrl.u32 %v273_v16, 7  ;;  %vm284_vm2 = vcmask 130112   ;;  %v374_v41 = vld [vmem:[%s1031_s3] sm:$0x3]  ;;  %s242_s29 = scalar_lea.vmem [#allocation5], %s581_s25  ;;  %s593_s14 = sshll.u32 %s838_s22, 9 }
  0x3c   : > { %614 = vmatprep.mubr.msk.f32.mxu1 %vm782_vm1, %v783_v15  ;;  %v279_v19 = vadd.s32 4294967288, %v274_v17  ;;  %v293_v20 = vadd.s32 4294967272, %v274_v17  ;;  %v286_v22 = vadd.s32 4294967280, %v274_v17  ;;  %vm291_vm3 = vcmask 195712   ;;  %v268_v42 = vld [vmem:[%s1030_s2] sm:$0x1]  ;;  %s982_s16 = scalar_lea.hbm %s1033_s5, %s593_s14 }
  0x3d   : > { %619 = vmatpush3.bf16.msra.mxu0 %v618_v11  ;;  %v277_v24 = vsub.s32 %v274_v17, %v276_v18  ;;  %vm298_vm4 = vcmask 261312   ;;  %vm300_vm5 = vcmask 261120   ;;  %vm380_vm6 = vcmask 1041408   ;;  %v375_v47 = vld [vmem:[%s1032_s4] sm:$0x1]  ;;  %s501_s12 = sshll.u32 %s242_s29, 4  ;;  %s976_s12 = int_to_ptr.vmem [resolvable:$true] %s501_s12 }
  0x3e   : > { %252 = vadd.xlane.f32.xlu0 %v251_v6  ;;  %258 = vadd.xlane.f32.xlu1 %v257_v7  ;;  %v282_v26 = vsub.s32 %v279_v19, %v276_v18  ;;  %v296_v27 = vsub.s32 %v293_v20, %v276_v18  ;;  %v289_v28 = vsub.s32 %v286_v22, %v276_v18  ;;  %vm376_vm7 = vcmask 15360   ;;  %s488_s8 = scalar_lea.sflag [#allocation4], %s921_s23  ;;  %s710_s7 = scalar_lea.vmem %s976_s12, 512 }
  0x3f   : > { %620 = vmatprep.subr.bf16.mxu0 %v781_v10  ;;  %613 = vmatpush3.msk.msra.mxu1 %vm380_vm6, %v374_v41  ;;  %v462_v54 = vsub.s32 0, %v276_v18  ;;  %p711_p6 = scmp.ne.s32.totalorder %s976_s12, %s710_s7  ;;  %p1040_p11 = scmp.ne.s32.totalorder %s1037_s30, 0 }
  0x40   : > { %s784_s22 = smov [#allocation5]  }
  0x41   : > { %622 = vmatpush3.bf16.msra.mxu0 %v621_v14  ;;  %p712_p12 = pnand %p711_p6, %p1040_p11  ;;  %s714_s9 = sshll.u32 %s784_s22, 4  ;;  %s715_s9 = int_to_ptr.vmem [resolvable:$false] %s714_s9 }
  0x42   : > { %s716_s10 = scalar_lea.vmem %s715_s9, 1024  ;;  %p717_p8 = scmp.lt.s32.totalorder %s976_s12, %s715_s9 }
  0x43   : > { %p713_p13 = pneg %p712_p12  ;;  %p718_p10 = scmp.lt.s32.totalorder %s716_s10, %s710_s7 }
  0x45   : > { %p719_p0 = por %p718_p10, %p717_p8 }
  0x47   : > { %p720_p2 = pnand %p719_p0, %p713_p13 }
  0xc7   : > { %v250_v21 = vpop.xlane.xlu0 %249  ;;  %v256_v23 = vpop.xlane.xlu1 %255 }
  0xc8   : > { %v260_v25 = vmul.f32 0.015625, %v250_v21  ;;  %v262_v29 = vmul.f32 0.015625, %v256_v23 }
  0xca   : > { %v278_v34 = vrot.slane %v260_v25, %v277_v24  ;;  %v290_v37 = vrot.slane %v262_v29, %v289_v28 }
  0xcb   : > { %v253_v30 = vpop.xlane.xlu0 %252  ;;  %v259_v31 = vpop.xlane.xlu1 %258 }
  0xcc   : > { %v261_v32 = vmul.f32 0.015625, %v253_v30  ;;  %v263_v33 = vmul.f32 0.015625, %v259_v31 }
  0xce   : > { %v283_v35 = vrot.slane %v261_v32, %v282_v26  ;;  %v297_v36 = vrot.slane %v263_v33, %v296_v27 }
  0xd0   : > { %v285_v38 = vsel %vm284_vm2, %v283_v35, %v278_v34 }
  0xd1   : > { %v292_v39 = vsel %vm291_vm3, %v290_v37, %v285_v38 }
  0xd2   : > { %v299_v40 = vsel %vm298_vm4, %v297_v36, %v292_v39 }
  0xd3   : > { %610 = vmatmul.mubr.msk.f32.vlgmr.msra.gmra.mrb[0].mxu0 %vm300_vm5, %v299_v40 }
 0x1a6   : > { %v369_v43 = vpop.f32.mrb[0].mxu0 }
 0x1a7   : > { %v370_v44 = vadd.f32 %v369_v43, %v268_v42  ;;  %v611_v45 = vpop.f32.mrb[1].mxu0 }
 0x1a9   : > { %v373_v46 = vmax.f32 %v370_v44, 0.0 }
 0x1ab   : > { %615 = vmatmul.mubr.msk.f32.vlgmr.msra.gmra.mrb[0].mxu1 %vm376_vm7, %v373_v46 }
 0x27e   : > { %v450_v48 = vpop.f32.mrb[0].mxu1 }
 0x27f   : > { %v451_v49 = vadd.f32 %v450_v48, %v375_v47  ;;  %v616_v50 = vpop.f32.mrb[1].mxu1 }
 0x281   : > { %v586_v51 = vmul.f32 -1.442695, %v451_v49 }
 0x283   : > { %676 = vpow2.f32 %v586_v51 }
 0x28d   : > { %v677_v52 = vpop.eup %676 }
 0x28e   : > { %v457_v53 = vadd.f32 1.0, %v677_v52 }
 0x290   : > { %678 = vrcp.f32 %v457_v53 }
 0x29a   : > { %v679_v55 = vpop.eup %678 }
 0x29b   : > { %v463_v56 = vrot.slane %v679_v55, %v462_v54 }
 0x29d   : > { %469 = vbcast.lane.b32.xlu1 %v463_v56, 264  ;;  %465 = vbcast.lane.b32.xlu0 %v463_v56, 256 }
 0x2a1   : > { %473 = vbcast.lane.b32.xlu1 %v463_v56, 272 }
 0x2a5   : > { %477 = vbcast.lane.b32.xlu1 %v463_v56, 280 }
 0x30f   : > { %v470_v57 = vpop.permute.xlu1 %469  ;;  %v466_v58 = vpop.permute.xlu0 %465 }
 0x310   : > { %v480_v59 = vmul.f32 %v470_v57, %v935_v2  ;;  %v479_v60 = vmul.f32 %v466_v58, %v931_v0 }
 0x312   : > { %484 = vst.msk [vmem:[%s242_s29 + $0x8] sm:$0xff] %vm247_vm0, %v480_v59  ;;  %483 = vst.msk [vmem:[%s242_s29] sm:$0xff] %vm247_vm0, %v479_v60 }
 0x313   : > { %v474_v61 = vpop.permute.xlu1 %473 }
 0x314   : > { %v481_v62 = vmul.f32 %v474_v61, %v933_v1 }
 0x316   : > { %485 = vst.msk [vmem:[%s242_s29 + $0x10] sm:$0xff] %vm247_vm0, %v481_v62 }
 0x317   : > { %v478_v63 = vpop.permute.xlu1 %477 }
 0x318   : > { %v482_v0 = vmul.f32 %v478_v63, %v941_v5 }
 0x31a   : > { %486 = vst.msk [vmem:[%s242_s29 + $0x18] sm:$0xff] %vm247_vm0, %v482_v0 }
 0x31b   : > { %723 = shalt.err (!%p720_p2)
}
 0x31c   : > { %s724_s11 = scalar_lea.hbm %s982_s16, 512  ;;  %s728_s26 = scalar_lea.hbm %s1033_s5, 1024 }
 0x31d   : > { %p725_p4 = scmp.ne.s32.totalorder %s982_s16, %s724_s11  ;;  %p729_p9 = scmp.lt.u32.totalorder %s982_s16, %s1033_s5 }
 0x31e   : > { %p730_p1 = scmp.lt.u32.totalorder %s728_s26, %s724_s11  ;;  %p732_p6 = scmp.lt.u32.totalorder %s724_s11, %s982_s16 }
 0x31f   : > { %p726_p5 = pnand %p725_p4, %p1040_p11 }
 0x320   : > { %p731_p3 = por %p730_p1, %p729_p9 }
 0x321   : > { %p727_p7 = pneg %p726_p5 }
 0x322   : > { %p733_p12 = por %p732_p6, %p731_p3 }
 0x324   : > { %p734_p13 = pnand %p733_p12, %p727_p7 }
 0x326   : > { %737 = shalt.err (!%p734_p13)
}
 0x327   : > { %s785_s14 = smov 128   ;;  %s786_s15 = smov 8  }
 0x328   : > { %625 = dma.vmem_to_hbm [thread:$0]  (%p1040_p11), %s976_s12, 512, %s982_s16, %s488_s8, %s785_s14, %s785_s14, %s786_s15  }
 0x329 PF: > { %s516_s25 = sand.u32 1, %s764_s18   ;;  %p1041_p8 = scmp.ne.s32.totalorder %s1038_s6, 0 }
 0x32a   : > { %p1042_p10 = scmp.ge.s32.totalorder %s776_s21, 2  ;;  %s517_s7 = scalar_lea.sflag [#allocation4], %s516_s25 }
 0x32c   : > { %p632_p0 = pnand %p1042_p10, %p1041_p8 }
 0x32e   : > { %759 = dma.done.wait (!%p632_p0), %s517_s7, 512  }
 0x32f   : > { %761 = vsyncadd (!%p632_p0), %s517_s7, 4294966784  ;;  %p18_p2 = scmp.ge.s32.totalorder %s842_s24, 4   ;;  %s1043_s18 = smov %s768_s19 }
 0x330   : > { %s1044_s19 = smov %s772_s20  ;;  %s1045_s20 = smov %s854_s27 }
 0x331   : > { %s1046_s21 = smov %s842_s24  ;;  %20 = sbr.rel (!%p18_p2) target bundleno = 5 (0x5), region = 85 }
 0x338   :  { %522 = vsyncpa [#allocation3], 1 }
 0x339   :  { %524 = vsyncpa [#allocation3 + $0x1], 1 }
 0x33a   :  { %525 = vsyncpa [#allocation4], 1 }
 0x33b   :  { %527 = vsyncpa [#allocation4 + $0x1], 1 }

</bundles_post_ra>
